<compile_context>
chip_gen: v5e
topology: v5e:2x2
jax: 0.10.0
libtpu: 0.0.40
codegen_flags: <defaults>
</compile_context>

<pallas_src>
import math

import jax
import jax.numpy as jnp
from jax.experimental import pallas as pl
from jax.experimental.pallas import tpu as pltpu

# ----------------------------- config (args) ---------------------------------
N_AGENTS = 3
N_ACTIONS = 5
RAW_INPUT_SHAPE = 16                       # raw env obs dim
OBS_AGENT_ID = True                        # extra inputs = agent one-hot
OBS_LAST_ACTION = False
INPUT_SHAPE = RAW_INPUT_SHAPE + (N_AGENTS if OBS_AGENT_ID else 0)   # 19
STATE_REPRE_DIM = 4
LATENT_DIM = STATE_REPRE_DIM * N_AGENTS    # 12
OB_EMBED_DIM = 16
HIDDEN_DIM = 32
ENC_HIDDEN_DIM = 32
BS = 2
N_ROWS = BS * N_AGENTS
USE_RNN = True
PROB = 0.0                                 # args.prob == 0 -> message-drop branch skipped
F32 = jnp.float32
# Set to jax.lax.Precision.HIGHEST for closer bit-parity with PyTorch f32 matmuls.
DOT_PRECISION = None

FC1_IN = OB_EMBED_DIM + LATENT_DIM + N_AGENTS            # 31
PROJ_COLS = ENC_HIDDEN_DIM + LATENT_DIM + OB_EMBED_DIM   # 60  (enc_fc | gate | ob_fc)
COL_GATE = ENC_HIDDEN_DIM
COL_OB = ENC_HIDDEN_DIM + LATENT_DIM
OUT_COLS = N_ACTIONS + HIDDEN_DIM + ENC_HIDDEN_DIM       # 69  (q | h | enc_h)


def _pad8(n):
    return ((n + 7) // 8) * 8


# ---- packed weight slab layout (rows; all row offsets multiples of 8) --------
OFF_W_IN = 0                                             # (19, 60) fused input proj
OFF_W_EGI = OFF_W_IN + _pad8(INPUT_SHAPE)                # (32, 96) enc GRU input path
OFF_W_EGH = OFF_W_EGI + _pad8(ENC_HIDDEN_DIM)            # (32, 96) enc GRU hidden path
OFF_W_EO = OFF_W_EGH + _pad8(ENC_HIDDEN_DIM)             # (32, 12) enc out (lane-tiled)
OFF_W_FC1 = OFF_W_EO + _pad8(ENC_HIDDEN_DIM)             # (31, 32) fc1 (ob|z|extra stacked)
OFF_W_RGI = OFF_W_FC1 + _pad8(FC1_IN)                    # (32, 96) rl GRU input path
OFF_W_RGH = OFF_W_RGI + _pad8(HIDDEN_DIM)                # (32, 96) rl GRU hidden path
OFF_W_FC2 = OFF_W_RGH + _pad8(HIDDEN_DIM)                # (32, 5)  fc2
OFF_MASK = OFF_W_FC2 + _pad8(HIDDEN_DIM)                 # (6, 12)  agent-placement mask
OFF_SUM = OFF_MASK + _pad8(N_ROWS)                       # (6, 6)   batch-block sum matrix
W_SLAB_ROWS = OFF_SUM + _pad8(N_ROWS)                    # 264
SLAB_COLS = 128

# ---- packed bias slab layout (one row per bias, width <= 128) ----------------
BROW_IN, BROW_EGI, BROW_EGH, BROW_EO, BROW_FC1, BROW_RGI, BROW_RGH, BROW_FC2 = range(8)
B_SLAB_ROWS = 8

_VMEM = lambda: pl.BlockSpec(memory_space=pltpu.MemorySpace.VMEM)


# ----------------------------- kernel math ------------------------------------
def _dot(a, b):
    return jnp.dot(a, b, preferred_element_type=F32, precision=DOT_PRECISION)


def _gru(x, h, w_i, b_i, w_h, b_h, hid):
    """PyTorch GRUCell with packed [in,3H]/[H,3H] weights, gate order (r, z, n)."""
    gi = _dot(x, w_i) + b_i
    gh = _dot(h, w_h) + b_h
    r = jax.nn.sigmoid(gi[:, 0:hid] + gh[:, 0:hid])
    z = jax.nn.sigmoid(gi[:, hid:2 * hid] + gh[:, hid:2 * hid])
    n = jnp.tanh(gi[:, 2 * hid:3 * hid] + r * gh[:, 2 * hid:3 * hid])
    return (1.0 - z) * n + z * h


def _forward_math(x, h_in, eh_in, w_ref, b_ref):
    """One AC3TAgent.forward step on values x/h_in/eh_in with packed param slabs."""
    def W(off, rows, cols):
        return w_ref[off:off + rows, 0:cols]

    def B(row, cols):
        return b_ref[row:row + 1, 0:cols]

    # fused input projection: [encoder fc | gate | ob_fc] in one dot
    proj = _dot(x, W(OFF_W_IN, INPUT_SHAPE, PROJ_COLS)) + B(BROW_IN, PROJ_COLS)
    e = jnp.maximum(proj[:, 0:ENC_HIDDEN_DIM], 0.0)                       # encoder fc + relu
    weighted = jax.nn.sigmoid(proj[:, COL_GATE:COL_GATE + LATENT_DIM])    # sigmoid(gate(inputs))
    ob_embed = proj[:, COL_OB:COL_OB + OB_EMBED_DIM]                      # ob_fc(raw_inputs)
    # TODO(synk): args.prob > 0 message-drop branch (argsort over |ob_embed|) not
    # implemented in-kernel; prob = 0 path only (the module's default here).

    # encoder GRUCell
    # TODO(synk): state_enc_REGISTRY[args.state_encoder] is external; implemented as
    # a representative fc -> GRUCell -> linear "ae" encoder (same as previous port).
    eh_new = _gru(e, eh_in,
                  W(OFF_W_EGI, ENC_HIDDEN_DIM, 3 * ENC_HIDDEN_DIM), B(BROW_EGI, 3 * ENC_HIDDEN_DIM),
                  W(OFF_W_EGH, ENC_HIDDEN_DIM, 3 * ENC_HIDDEN_DIM), B(BROW_EGH, 3 * ENC_HIDDEN_DIM),
                  ENC_HIDDEN_DIM)

    # encoder output + in-kernel equivalent of
    #   z = z_agent.reshape(bs, latent); repeated_z = z.repeat per agent
    # w_eo is pre-tiled along columns so z_tiled[i] = [z_agent[i]]*n_agents; the
    # constant mask places each agent's block, and summat sums within a batch block.
    z_tiled = _dot(eh_new, W(OFF_W_EO, ENC_HIDDEN_DIM, LATENT_DIM)) + B(BROW_EO, LATENT_DIM)
    mask = W(OFF_MASK, N_ROWS, LATENT_DIM)
    summat = W(OFF_SUM, N_ROWS, N_ROWS)
    repeated_z = _dot(summat, z_tiled * mask)
    weighted_z = weighted * repeated_z

    # RL head: fc1 on cat([ob_embed, weighted_z, extra_inputs]) as a single dot
    extra = x[:, RAW_INPUT_SHAPE:INPUT_SHAPE]
    action_in = jnp.concatenate([ob_embed, weighted_z, extra], axis=-1)
    xact = jnp.maximum(
        _dot(action_in, W(OFF_W_FC1, FC1_IN, HIDDEN_DIM)) + B(BROW_FC1, HIDDEN_DIM), 0.0)

    # rl GRUCell (use_rnn=True)
    h_new = _gru(xact, h_in,
                 W(OFF_W_RGI, HIDDEN_DIM, 3 * HIDDEN_DIM), B(BROW_RGI, 3 * HIDDEN_DIM),
                 W(OFF_W_RGH, HIDDEN_DIM, 3 * HIDDEN_DIM), B(BROW_RGH, 3 * HIDDEN_DIM),
                 HIDDEN_DIM)

    q = _dot(h_new, W(OFF_W_FC2, HIDDEN_DIM, N_ACTIONS)) + B(BROW_FC2, N_ACTIONS)
    return q, h_new, eh_new


# ----------------------------- kernels ----------------------------------------
def _step_kernel(x_ref, h_ref, eh_ref, w_ref, b_ref, out_ref):
    q, h_new, eh_new = _forward_math(x_ref[...], h_ref[...], eh_ref[...], w_ref, b_ref)
    # single packed lane-contiguous output slab: [q | h | enc_h]
    out_ref[...] = jnp.concatenate([q, h_new, eh_new], axis=-1)


def _rollout_kernel(x_ref, h0_ref, eh0_ref, w_ref, b_ref,
                    q_ref, hout_ref, ehout_ref, h_sc, eh_sc):
    @pl.when(pl.program_id(0) == 0)
    def _():
        h_sc[...] = h0_ref[...]
        eh_sc[...] = eh0_ref[...]

    q, h_new, eh_new = _forward_math(x_ref[...], h_sc[...], eh_sc[...], w_ref, b_ref)
    h_sc[...] = h_new
    eh_sc[...] = eh_new
    q_ref[...] = q
    hout_ref[...] = h_new
    ehout_ref[...] = eh_new


# ----------------------------- wrappers ----------------------------------------
def ac3t_forward(params, inputs, hidden_state, encoder_hidden_state):
    """One fused step. Mirrors AC3TAgent.forward (ae encoder, noise_env=False,
    prob=0, use_rnn=True). Returns (q, h, encoder_h)."""
    n = inputs.shape[0]
    h_in = hidden_state.reshape(-1, HIDDEN_DIM)
    eh_in = encoder_hidden_state.reshape(-1, ENC_HIDDEN_DIM)
    out = pl.pallas_call(
        _step_kernel,
        out_shape=jax.ShapeDtypeStruct((n, OUT_COLS), F32),
        in_specs=[_VMEM() for _ in range(5)],
        out_specs=_VMEM(),
    )(inputs, h_in, eh_in, params["w"], params["b"])
    q = out[:, 0:N_ACTIONS]
    h = out[:, N_ACTIONS:N_ACTIONS + HIDDEN_DIM]
    enc_h = out[:, N_ACTIONS + HIDDEN_DIM:OUT_COLS]
    return q, h, enc_h


def ac3t_rollout(params, inputs_seq, hidden_state, encoder_hidden_state):
    """T forward steps inside ONE kernel (grid over time). Weight/bias slabs use a
    constant index_map so they stay resident in VMEM; hidden states are carried in
    VMEM scratch. Returns (q_seq[T], h_last, encoder_h_last)."""
    T, n, _ = inputs_seq.shape
    h0 = hidden_state.reshape(-1, HIDDEN_DIM)
    eh0 = encoder_hidden_state.reshape(-1, ENC_HIDDEN_DIM)
    grid_spec = pltpu.PrefetchScalarGridSpec(
        num_scalar_prefetch=0,
        grid=(T,),
        in_specs=[
            pl.BlockSpec((None, n, INPUT_SHAPE), lambda t: (t, 0, 0)),   # per-step inputs
            pl.BlockSpec((n, HIDDEN_DIM), lambda t: (0, 0)),             # h0 (resident)
            pl.BlockSpec((n, ENC_HIDDEN_DIM), lambda t: (0, 0)),         # enc_h0 (resident)
            pl.BlockSpec((W_SLAB_ROWS, SLAB_COLS), lambda t: (0, 0)),    # weights (resident)
            pl.BlockSpec((B_SLAB_ROWS, SLAB_COLS), lambda t: (0, 0)),    # biases (resident)
        ],
        out_specs=[
            pl.BlockSpec((None, n, N_ACTIONS), lambda t: (t, 0, 0)),     # q per step
            pl.BlockSpec((n, HIDDEN_DIM), lambda t: (0, 0)),             # final h
            pl.BlockSpec((n, ENC_HIDDEN_DIM), lambda t: (0, 0)),         # final enc_h
        ],
        scratch_shapes=[pltpu.VMEM((n, HIDDEN_DIM), F32),
                        pltpu.VMEM((n, ENC_HIDDEN_DIM), F32)],
    )
    q_seq, h_last, eh_last = pl.pallas_call(
        _rollout_kernel,
        out_shape=(jax.ShapeDtypeStruct((T, n, N_ACTIONS), F32),
                   jax.ShapeDtypeStruct((n, HIDDEN_DIM), F32),
                   jax.ShapeDtypeStruct((n, ENC_HIDDEN_DIM), F32)),
        grid_spec=grid_spec,
        compiler_params=pltpu.CompilerParams(dimension_semantics=("arbitrary",)),
    )(inputs_seq, h0, eh0, params["w"], params["b"])
    return q_seq, h_last, eh_last


# ----------------------------- parameter init / packing -----------------------
def make_params(key):
    ks = iter(jax.random.split(key, 24))

    def u(shape, bound):
        return jax.random.uniform(next(ks), shape, F32, -bound, bound)

    def lin(fan_in, fan_out, bound=None):
        b = bound if bound is not None else 1.0 / math.sqrt(fan_in)
        return u((fan_in, fan_out), b), u((1, fan_out), b)

    def gru(in_dim, hid):
        b = 1.0 / math.sqrt(hid)
        return (u((in_dim, 3 * hid), b), u((1, 3 * hid), b),     # input path (r|z|n)
                u((hid, 3 * hid), b), u((1, 3 * hid), b))        # hidden path (r|z|n)

    # encoder (synthetic "ae" stand-in): fc -> GRUCell -> linear(enc_hidden -> repre)
    w_efc, b_efc = lin(INPUT_SHAPE, ENC_HIDDEN_DIM)
    w_egi, b_egi, w_egh, b_egh = gru(ENC_HIDDEN_DIM, ENC_HIDDEN_DIM)
    w_eo, b_eo = lin(ENC_HIDDEN_DIM, STATE_REPRE_DIM)

    # RL head
    w_gate, b_gate = lin(INPUT_SHAPE, LATENT_DIM)
    w_ob, b_ob = lin(RAW_INPUT_SHAPE, OB_EMBED_DIM)
    fb = 1.0 / math.sqrt(FC1_IN)
    w1_ob = u((OB_EMBED_DIM, HIDDEN_DIM), fb)
    w1_z = u((LATENT_DIM, HIDDEN_DIM), fb)
    w1_ex = u((N_AGENTS, HIDDEN_DIM), fb)
    b1 = u((1, HIDDEN_DIM), fb)
    w_rgi, b_rgi, w_rgh, b_rgh = gru(HIDDEN_DIM, HIDDEN_DIM)
    w2, b2 = lin(HIDDEN_DIM, N_ACTIONS)

    # ---- pack into two slabs ----
    # fused input projection [enc_fc | gate | ob_fc(raw rows only)]
    w_in = jnp.zeros((INPUT_SHAPE, PROJ_COLS), F32)
    w_in = w_in.at[:, 0:ENC_HIDDEN_DIM].set(w_efc)
    w_in = w_in.at[:, COL_GATE:COL_GATE + LATENT_DIM].set(w_gate)
    w_in = w_in.at[:RAW_INPUT_SHAPE, COL_OB:COL_OB + OB_EMBED_DIM].set(w_ob)
    b_in = jnp.concatenate([b_efc, b_gate, b_ob], axis=1)          # (1, 60)

    w_eo_wide = jnp.concatenate([w_eo] * N_AGENTS, axis=1)          # (32, 12)
    b_eo_wide = jnp.concatenate([b_eo] * N_AGENTS, axis=1)          # (1, 12)
    w_fc1 = jnp.concatenate([w1_ob, w1_z, w1_ex], axis=0)           # (31, 32)

    # constants implementing reshape(bs, latent) + per-agent repeat inside the kernel
    ri = jnp.arange(N_ROWS)[:, None]
    cj = jnp.arange(LATENT_DIM)[None, :]
    mask = ((ri % N_AGENTS) == (cj // STATE_REPRE_DIM)).astype(F32)     # (6, 12)
    si = jnp.arange(N_ROWS)[:, None]
    sj = jnp.arange(N_ROWS)[None, :]
    summat = ((si // N_AGENTS) == (sj // N_AGENTS)).astype(F32)         # (6, 6)

    w_slab = jnp.zeros((W_SLAB_ROWS, SLAB_COLS), F32)

    def put(slab, off, w):
        return slab.at[off:off + w.shape[0], 0:w.shape[1]].set(w)

    w_slab = put(w_slab, OFF_W_IN, w_in)
    w_slab = put(w_slab, OFF_W_EGI, w_egi)
    w_slab = put(w_slab, OFF_W_EGH, w_egh)
    w_slab = put(w_slab, OFF_W_EO, w_eo_wide)
    w_slab = put(w_slab, OFF_W_FC1, w_fc1)
    w_slab = put(w_slab, OFF_W_RGI, w_rgi)
    w_slab = put(w_slab, OFF_W_RGH, w_rgh)
    w_slab = put(w_slab, OFF_W_FC2, w2)
    w_slab = put(w_slab, OFF_MASK, mask)
    w_slab = put(w_slab, OFF_SUM, summat)

    b_slab = jnp.zeros((B_SLAB_ROWS, SLAB_COLS), F32)
    for row, b in [(BROW_IN, b_in), (BROW_EGI, b_egi), (BROW_EGH, b_egh),
                   (BROW_EO, b_eo_wide), (BROW_FC1, b1), (BROW_RGI, b_rgi),
                   (BROW_RGH, b_rgh), (BROW_FC2, b2)]:
        b_slab = b_slab.at[row:row + 1, 0:b.shape[1]].set(b)

    return {"w": w_slab, "b": b_slab}


# ----------------------------- main --------------------------------------------
if __name__ == "__main__":
    key = jax.random.PRNGKey(0)
    k_param, k_obs, k_seq = jax.random.split(key, 3)
    params = make_params(k_param)

    # inputs = [raw obs | agent-id one-hot], rows = bs * n_agents
    raw_obs = jax.random.normal(k_obs, (N_ROWS, RAW_INPUT_SHAPE), F32)
    agent_ids = jnp.tile(jnp.eye(N_AGENTS, dtype=F32), (BS, 1))
    inputs = jnp.concatenate([raw_obs, agent_ids], axis=-1)          # (6, 19)

    hidden_state = jnp.zeros((N_ROWS, HIDDEN_DIM), F32)              # init_hidden, expanded
    encoder_hidden_state = jnp.zeros((N_ROWS, ENC_HIDDEN_DIM), F32)

    # single fused step
    q, h, enc_h = ac3t_forward(params, inputs, hidden_state, encoder_hidden_state)
    jax.block_until_ready((q, h, enc_h))
    assert q.shape == (N_ROWS, N_ACTIONS)
    assert h.shape == (N_ROWS, HIDDEN_DIM)
    assert enc_h.shape == (N_ROWS, ENC_HIDDEN_DIM)
    assert bool(jnp.all(jnp.isfinite(q))) and bool(jnp.all(jnp.isfinite(h)))

    # multi-step rollout in one kernel (weights stay resident in VMEM)
    T = 8
    raw_seq = jax.random.normal(k_seq, (T, N_ROWS, RAW_INPUT_SHAPE), F32)
    ids_seq = jnp.broadcast_to(agent_ids, (T, N_ROWS, N_AGENTS))
    inputs_seq = jnp.concatenate([raw_seq, ids_seq], axis=-1)        # (8, 6, 19)
    inputs_seq = inputs_seq.at[0].set(inputs)                        # step 0 == single step
    q_seq, h_last, eh_last = ac3t_rollout(params, inputs_seq, hidden_state,
                                          encoder_hidden_state)
    jax.block_until_ready((q_seq, h_last, eh_last))
    assert q_seq.shape == (T, N_ROWS, N_ACTIONS)
    assert h_last.shape == (N_ROWS, HIDDEN_DIM)
    assert bool(jnp.all(jnp.isfinite(q_seq)))
    assert bool(jnp.allclose(q_seq[0], q, atol=1e-5, rtol=1e-5))     # step-0 consistency

    print("KERNEL_OK")
</pallas_src>

<mosaic_0001>
module attributes {stable_mosaic.version = 11 : i64} {
  func.func @_step_kernel(%arg0: memref<6x19xf32, #tpu.memory_space<vmem>>, %arg1: memref<6x32xf32, #tpu.memory_space<vmem>>, %arg2: memref<6x32xf32, #tpu.memory_space<vmem>>, %arg3: memref<264x128xf32, #tpu.memory_space<vmem>>, %arg4: memref<8x128xf32, #tpu.memory_space<vmem>>, %arg5: memref<6x69xf32, #tpu.memory_space<vmem>>) attributes {dimension_semantics = [], scalar_prefetch = 0 : i64, scratch_operands = 0 : i64, tpu.core_type = #tpu.core_type<tc>} {
    %c0 = arith.constant 0 : index
    %c0_0 = arith.constant 0 : index
    %0 = vector.load %arg0[%c0, %c0_0] : memref<6x19xf32, #tpu.memory_space<vmem>>, vector<6x19xf32>
    %c0_1 = arith.constant 0 : index
    %c0_2 = arith.constant 0 : index
    %1 = vector.load %arg1[%c0_1, %c0_2] : memref<6x32xf32, #tpu.memory_space<vmem>>, vector<6x32xf32>
    %c0_3 = arith.constant 0 : index
    %c0_4 = arith.constant 0 : index
    %2 = vector.load %arg2[%c0_3, %c0_4] : memref<6x32xf32, #tpu.memory_space<vmem>>, vector<6x32xf32>
    %c0_5 = arith.constant 0 : index
    %c0_6 = arith.constant 0 : index
    %3 = vector.load %arg3[%c0_5, %c0_6] : memref<264x128xf32, #tpu.memory_space<vmem>>, vector<19x60xf32>
    %cst = arith.constant dense<0.000000e+00> : vector<6x60xf32>
    %4 = tpu.matmul %0, %3, %cst {dimension_numbers = #tpu.dot_dimension_numbers<[1], [0], [0], [1], [0, 0, 1, 1], [], []>} : vector<6x19xf32>, vector<19x60xf32>, vector<6x60xf32> -> vector<6x60xf32>
    %c0_7 = arith.constant 0 : index
    %c0_8 = arith.constant 0 : index
    %5 = vector.load %arg4[%c0_7, %c0_8] : memref<8x128xf32, #tpu.memory_space<vmem>>, vector<1x60xf32>
    %6 = vector.broadcast %5 : vector<1x60xf32> to vector<6x60xf32>
    %7 = arith.addf %4, %6 : vector<6x60xf32>
    %8 = vector.extract_strided_slice %7 {offsets = [0, 0], sizes = [6, 32], strides = [1, 1]} : vector<6x60xf32> to vector<6x32xf32>
    %cst_9 = arith.constant 0.000000e+00 : f32
    %9 = vector.broadcast %cst_9 : f32 to vector<6x32xf32>
    %10 = arith.maximumf %8, %9 : vector<6x32xf32>
    %11 = vector.extract_strided_slice %7 {offsets = [0, 32], sizes = [6, 12], strides = [1, 1]} : vector<6x60xf32> to vector<6x12xf32>
    %12 = arith.negf %11 : vector<6x12xf32>
    %13 = math.exp %12 : vector<6x12xf32>
    %cst_10 = arith.constant 1.000000e+00 : f32
    %14 = vector.broadcast %cst_10 : f32 to vector<6x12xf32>
    %15 = arith.addf %14, %13 : vector<6x12xf32>
    %16 = arith.divf %14, %15 : vector<6x12xf32>
    %17 = vector.extract_strided_slice %7 {offsets = [0, 44], sizes = [6, 16], strides = [1, 1]} : vector<6x60xf32> to vector<6x16xf32>
    %c24 = arith.constant 24 : index
    %c0_11 = arith.constant 0 : index
    %18 = vector.load %arg3[%c24, %c0_11] : memref<264x128xf32, #tpu.memory_space<vmem>>, vector<32x96xf32>
    %c1 = arith.constant 1 : index
    %c0_12 = arith.constant 0 : index
    %19 = vector.load %arg4[%c1, %c0_12] : memref<8x128xf32, #tpu.memory_space<vmem>>, vector<1x96xf32>
    %c56 = arith.constant 56 : index
    %c0_13 = arith.constant 0 : index
    %20 = vector.load %arg3[%c56, %c0_13] : memref<264x128xf32, #tpu.memory_space<vmem>>, vector<32x96xf32>
    %c2 = arith.constant 2 : index
    %c0_14 = arith.constant 0 : index
    %21 = vector.load %arg4[%c2, %c0_14] : memref<8x128xf32, #tpu.memory_space<vmem>>, vector<1x96xf32>
    %cst_15 = arith.constant dense<0.000000e+00> : vector<6x96xf32>
    %22 = tpu.matmul %10, %18, %cst_15 {dimension_numbers = #tpu.dot_dimension_numbers<[1], [0], [0], [1], [0, 0, 1, 1], [], []>} : vector<6x32xf32>, vector<32x96xf32>, vector<6x96xf32> -> vector<6x96xf32>
    %23 = vector.broadcast %19 : vector<1x96xf32> to vector<6x96xf32>
    %24 = arith.addf %22, %23 : vector<6x96xf32>
    %cst_16 = arith.constant dense<0.000000e+00> : vector<6x96xf32>
    %25 = tpu.matmul %2, %20, %cst_16 {dimension_numbers = #tpu.dot_dimension_numbers<[1], [0], [0], [1], [0, 0, 1, 1], [], []>} : vector<6x32xf32>, vector<32x96xf32>, vector<6x96xf32> -> vector<6x96xf32>
    %26 = vector.broadcast %21 : vector<1x96xf32> to vector<6x96xf32>
    %27 = arith.addf %25, %26 : vector<6x96xf32>
    %28 = vector.extract_strided_slice %24 {offsets = [0, 0], sizes = [6, 32], strides = [1, 1]} : vector<6x96xf32> to vector<6x32xf32>
    %29 = vector.extract_strided_slice %27 {offsets = [0, 0], sizes = [6, 32], strides = [1, 1]} : vector<6x96xf32> to vector<6x32xf32>
    %30 = arith.addf %28, %29 : vector<6x32xf32>
    %31 = arith.negf %30 : vector<6x32xf32>
    %32 = math.exp %31 : vector<6x32xf32>
    %cst_17 = arith.constant 1.000000e+00 : f32
    %33 = vector.broadcast %cst_17 : f32 to vector<6x32xf32>
    %34 = arith.addf %33, %32 : vector<6x32xf32>
    %35 = arith.divf %33, %34 : vector<6x32xf32>
    %36 = vector.extract_strided_slice %24 {offsets = [0, 32], sizes = [6, 32], strides = [1, 1]} : vector<6x96xf32> to vector<6x32xf32>
    %37 = vector.extract_strided_slice %27 {offsets = [0, 32], sizes = [6, 32], strides = [1, 1]} : vector<6x96xf32> to vector<6x32xf32>
    %38 = arith.addf %36, %37 : vector<6x32xf32>
    %39 = arith.negf %38 : vector<6x32xf32>
    %40 = math.exp %39 : vector<6x32xf32>
    %cst_18 = arith.constant 1.000000e+00 : f32
    %41 = vector.broadcast %cst_18 : f32 to vector<6x32xf32>
    %42 = arith.addf %41, %40 : vector<6x32xf32>
    %43 = arith.divf %41, %42 : vector<6x32xf32>
    %44 = vector.extract_strided_slice %24 {offsets = [0, 64], sizes = [6, 32], strides = [1, 1]} : vector<6x96xf32> to vector<6x32xf32>
    %45 = vector.extract_strided_slice %27 {offsets = [0, 64], sizes = [6, 32], strides = [1, 1]} : vector<6x96xf32> to vector<6x32xf32>
    %46 = arith.mulf %35, %45 : vector<6x32xf32>
    %47 = arith.addf %44, %46 : vector<6x32xf32>
    %48 = math.tanh %47 : vector<6x32xf32>
    %cst_19 = arith.constant 1.000000e+00 : f32
    %49 = vector.broadcast %cst_19 : f32 to vector<6x32xf32>
    %50 = arith.subf %49, %43 : vector<6x32xf32>
    %51 = arith.mulf %50, %48 : vector<6x32xf32>
    %52 = arith.mulf %43, %2 : vector<6x32xf32>
    %53 = arith.addf %51, %52 : vector<6x32xf32>
    %c88 = arith.constant 88 : index
    %c0_20 = arith.constant 0 : index
    %54 = vector.load %arg3[%c88, %c0_20] : memref<264x128xf32, #tpu.memory_space<vmem>>, vector<32x12xf32>
    %cst_21 = arith.constant dense<0.000000e+00> : vector<6x12xf32>
    %55 = tpu.matmul %53, %54, %cst_21 {dimension_numbers = #tpu.dot_dimension_numbers<[1], [0], [0], [1], [0, 0, 1, 1], [], []>} : vector<6x32xf32>, vector<32x12xf32>, vector<6x12xf32> -> vector<6x12xf32>
    %c3 = arith.constant 3 : index
    %c0_22 = arith.constant 0 : index
    %56 = vector.load %arg4[%c3, %c0_22] : memref<8x128xf32, #tpu.memory_space<vmem>>, vector<1x12xf32>
    %57 = vector.broadcast %56 : vector<1x12xf32> to vector<6x12xf32>
    %58 = arith.addf %55, %57 : vector<6x12xf32>
    %c248 = arith.constant 248 : index
    %c0_23 = arith.constant 0 : index
    %59 = vector.load %arg3[%c248, %c0_23] : memref<264x128xf32, #tpu.memory_space<vmem>>, vector<6x12xf32>
    %c256 = arith.constant 256 : index
    %c0_24 = arith.constant 0 : index
    %60 = vector.load %arg3[%c256, %c0_24] : memref<264x128xf32, #tpu.memory_space<vmem>>, vector<6x6xf32>
    %61 = arith.mulf %58, %59 : vector<6x12xf32>
    %cst_25 = arith.constant dense<0.000000e+00> : vector<6x12xf32>
    %62 = tpu.matmul %60, %61, %cst_25 {dimension_numbers = #tpu.dot_dimension_numbers<[1], [0], [0], [1], [0, 0, 1, 1], [], []>} : vector<6x6xf32>, vector<6x12xf32>, vector<6x12xf32> -> vector<6x12xf32>
    %63 = arith.mulf %16, %62 : vector<6x12xf32>
    %64 = vector.extract_strided_slice %0 {offsets = [0, 16], sizes = [6, 3], strides = [1, 1]} : vector<6x19xf32> to vector<6x3xf32>
    %65 = tpu.concatenate %17, %63, %64 in 1 : vector<6x16xf32>, vector<6x12xf32>, vector<6x3xf32> -> vector<6x31xf32>
    %c120 = arith.constant 120 : index
    %c0_26 = arith.constant 0 : index
    %66 = vector.load %arg3[%c120, %c0_26] : memref<264x128xf32, #tpu.memory_space<vmem>>, vector<31x32xf32>
    %cst_27 = arith.constant dense<0.000000e+00> : vector<6x32xf32>
    %67 = tpu.matmul %65, %66, %cst_27 {dimension_numbers = #tpu.dot_dimension_numbers<[1], [0], [0], [1], [0, 0, 1, 1], [], []>} : vector<6x31xf32>, vector<31x32xf32>, vector<6x32xf32> -> vector<6x32xf32>
    %c4 = arith.constant 4 : index
    %c0_28 = arith.constant 0 : index
    %68 = vector.load %arg4[%c4, %c0_28] : memref<8x128xf32, #tpu.memory_space<vmem>>, vector<1x32xf32>
    %69 = vector.broadcast %68 : vector<1x32xf32> to vector<6x32xf32>
    %70 = arith.addf %67, %69 : vector<6x32xf32>
    %cst_29 = arith.constant 0.000000e+00 : f32
    %71 = vector.broadcast %cst_29 : f32 to vector<6x32xf32>
    %72 = arith.maximumf %70, %71 : vector<6x32xf32>
    %c152 = arith.constant 152 : index
    %c0_30 = arith.constant 0 : index
    %73 = vector.load %arg3[%c152, %c0_30] : memref<264x128xf32, #tpu.memory_space<vmem>>, vector<32x96xf32>
    %c5 = arith.constant 5 : index
    %c0_31 = arith.constant 0 : index
    %74 = vector.load %arg4[%c5, %c0_31] : memref<8x128xf32, #tpu.memory_space<vmem>>, vector<1x96xf32>
    %c184 = arith.constant 184 : index
    %c0_32 = arith.constant 0 : index
    %75 = vector.load %arg3[%c184, %c0_32] : memref<264x128xf32, #tpu.memory_space<vmem>>, vector<32x96xf32>
    %c6 = arith.constant 6 : index
    %c0_33 = arith.constant 0 : index
    %76 = vector.load %arg4[%c6, %c0_33] : memref<8x128xf32, #tpu.memory_space<vmem>>, vector<1x96xf32>
    %cst_34 = arith.constant dense<0.000000e+00> : vector<6x96xf32>
    %77 = tpu.matmul %72, %73, %cst_34 {dimension_numbers = #tpu.dot_dimension_numbers<[1], [0], [0], [1], [0, 0, 1, 1], [], []>} : vector<6x32xf32>, vector<32x96xf32>, vector<6x96xf32> -> vector<6x96xf32>
    %78 = vector.broadcast %74 : vector<1x96xf32> to vector<6x96xf32>
    %79 = arith.addf %77, %78 : vector<6x96xf32>
    %cst_35 = arith.constant dense<0.000000e+00> : vector<6x96xf32>
    %80 = tpu.matmul %1, %75, %cst_35 {dimension_numbers = #tpu.dot_dimension_numbers<[1], [0], [0], [1], [0, 0, 1, 1], [], []>} : vector<6x32xf32>, vector<32x96xf32>, vector<6x96xf32> -> vector<6x96xf32>
    %81 = vector.broadcast %76 : vector<1x96xf32> to vector<6x96xf32>
    %82 = arith.addf %80, %81 : vector<6x96xf32>
    %83 = vector.extract_strided_slice %79 {offsets = [0, 0], sizes = [6, 32], strides = [1, 1]} : vector<6x96xf32> to vector<6x32xf32>
    %84 = vector.extract_strided_slice %82 {offsets = [0, 0], sizes = [6, 32], strides = [1, 1]} : vector<6x96xf32> to vector<6x32xf32>
    %85 = arith.addf %83, %84 : vector<6x32xf32>
    %86 = arith.negf %85 : vector<6x32xf32>
    %87 = math.exp %86 : vector<6x32xf32>
    %cst_36 = arith.constant 1.000000e+00 : f32
    %88 = vector.broadcast %cst_36 : f32 to vector<6x32xf32>
    %89 = arith.addf %88, %87 : vector<6x32xf32>
    %90 = arith.divf %88, %89 : vector<6x32xf32>
    %91 = vector.extract_strided_slice %79 {offsets = [0, 32], sizes = [6, 32], strides = [1, 1]} : vector<6x96xf32> to vector<6x32xf32>
    %92 = vector.extract_strided_slice %82 {offsets = [0, 32], sizes = [6, 32], strides = [1, 1]} : vector<6x96xf32> to vector<6x32xf32>
    %93 = arith.addf %91, %92 : vector<6x32xf32>
    %94 = arith.negf %93 : vector<6x32xf32>
    %95 = math.exp %94 : vector<6x32xf32>
    %cst_37 = arith.constant 1.000000e+00 : f32
    %96 = vector.broadcast %cst_37 : f32 to vector<6x32xf32>
    %97 = arith.addf %96, %95 : vector<6x32xf32>
    %98 = arith.divf %96, %97 : vector<6x32xf32>
    %99 = vector.extract_strided_slice %79 {offsets = [0, 64], sizes = [6, 32], strides = [1, 1]} : vector<6x96xf32> to vector<6x32xf32>
    %100 = vector.extract_strided_slice %82 {offsets = [0, 64], sizes = [6, 32], strides = [1, 1]} : vector<6x96xf32> to vector<6x32xf32>
    %101 = arith.mulf %90, %100 : vector<6x32xf32>
    %102 = arith.addf %99, %101 : vector<6x32xf32>
    %103 = math.tanh %102 : vector<6x32xf32>
    %cst_38 = arith.constant 1.000000e+00 : f32
    %104 = vector.broadcast %cst_38 : f32 to vector<6x32xf32>
    %105 = arith.subf %104, %98 : vector<6x32xf32>
    %106 = arith.mulf %105, %103 : vector<6x32xf32>
    %107 = arith.mulf %98, %1 : vector<6x32xf32>
    %108 = arith.addf %106, %107 : vector<6x32xf32>
    %c216 = arith.constant 216 : index
    %c0_39 = arith.constant 0 : index
    %109 = vector.load %arg3[%c216, %c0_39] : memref<264x128xf32, #tpu.memory_space<vmem>>, vector<32x5xf32>
    %cst_40 = arith.constant dense<0.000000e+00> : vector<6x5xf32>
    %110 = tpu.matmul %108, %109, %cst_40 {dimension_numbers = #tpu.dot_dimension_numbers<[1], [0], [0], [1], [0, 0, 1, 1], [], []>} : vector<6x32xf32>, vector<32x5xf32>, vector<6x5xf32> -> vector<6x5xf32>
    %c7 = arith.constant 7 : index
    %c0_41 = arith.constant 0 : index
    %111 = vector.load %arg4[%c7, %c0_41] : memref<8x128xf32, #tpu.memory_space<vmem>>, vector<1x5xf32>
    %112 = vector.broadcast %111 : vector<1x5xf32> to vector<6x5xf32>
    %113 = arith.addf %110, %112 : vector<6x5xf32>
    %114 = tpu.concatenate %113, %108, %53 in 1 : vector<6x5xf32>, vector<6x32xf32>, vector<6x32xf32> -> vector<6x69xf32>
    %c0_42 = arith.constant 0 : index
    %c0_43 = arith.constant 0 : index
    %115 = vector.load %arg5[%c0_42, %c0_43] : memref<6x69xf32, #tpu.memory_space<vmem>>, vector<6x69xf32>
    tpu.vector_store %arg5[%c0_42, %c0_43], %114 {strides = array<i32>} : memref<6x69xf32, #tpu.memory_space<vmem>>, vector<6x69xf32>,
    return
  }
}

</mosaic_0001>

<bundles_post_ra>
// kernel: tpu_custom_call.1
= control target key start
LH: loop header
LB: loop body
LE: loop exit
PB: predicated region body
PF: predicated region fallthrough
CT: control target
= control target key end

     0   :  { %10 = vsyncpa [#allocation3], 0  ;;  %s828_s0 = inlined_call_operand.hbm [shape: f32[6,19], index: 0, kind: input, shape index: {}]   ;;  %s829_s1 = inlined_call_operand.hbm [shape: f32[6,32], index: 1, kind: input, shape index: {}]   ;;  %s830_s2 = inlined_call_operand.hbm [shape: f32[6,32], index: 2, kind: input, shape index: {}]   ;;  %s831_s3 = inlined_call_operand.hbm [shape: f32[264,128], index: 3, kind: input, shape index: {}]   ;;  %s832_s4 = inlined_call_operand.hbm [shape: f32[8,128], index: 4, kind: input, shape index: {}]   ;;  %s833_s5 = inlined_call_operand.hbm [shape: f32[6,69], index: 5, kind: output, shape index: {}]  }
   0x1   :  { %11 = vsyncpa [#allocation6], 0 }
   0x2   :  { %12 = vsyncpa [#allocation9], 0  ;;  %s30_s20 = sshll.u32 %s829_s1, 4  ;;  %s31_s20 = int_to_ptr.hbm [resolvable:$true] %s30_s20 }
   0x3   :  { %13 = vsyncpa [#allocation4], 0  ;;  %s734_s21 = smov [#allocation5]   ;;  %s51_s25 = sshll.u32 %s831_s3, 4  ;;  %s52_s25 = int_to_ptr.hbm [resolvable:$true] %s51_s25 }
   0x4   :  { %s32_s22 = sshll.u32 %s734_s21, 4  ;;  %s735_s26 = smov [#allocation8]   ;;  %s33_s22 = int_to_ptr.vmem [resolvable:$true] %s32_s22 }
   0x5   :  { %35 = dma.hbm_to_vmem [thread:$0]  %s31_s20, 128, %s33_s22, [#allocation6]  }
   0x6   :  { %s53_s27 = sshll.u32 %s735_s26, 4  ;;  %s736_s28 = smov 128   ;;  %s54_s27 = int_to_ptr.vmem [resolvable:$true] %s53_s27 }
   0x7   :  { %s737_s29 = smov 8   ;;  %s19_s1 = sshll.u32 %s828_s0, 4  ;;  %s20_s1 = int_to_ptr.hbm [resolvable:$true] %s19_s1 }
   0x8   :  { %59 = dma.hbm_to_vmem [thread:$0]  %s52_s25, 4224, %s54_s27, [#allocation9], %s736_s28, %s736_s28, %s737_s29  }
   0x9   :  { %s738_s7 = smov [#allocation2]   ;;  %s41_s3 = sshll.u32 %s830_s2, 4  ;;  %s42_s3 = int_to_ptr.hbm [resolvable:$true] %s41_s3 }
   0xa   :  { %s21_s8 = sshll.u32 %s738_s7, 4  ;;  %s739_s11 = smov [#allocation7]   ;;  %s22_s8 = int_to_ptr.vmem [resolvable:$true] %s21_s8 }
   0xb   :  { %24 = dma.hbm_to_vmem [thread:$0]  %s20_s1, 128, %s22_s8, [#allocation3]  }
   0xc   :  { %s43_s12 = sshll.u32 %s739_s11, 4  ;;  %s65_s15 = sshll.u32 %s832_s4, 4  ;;  %s44_s12 = int_to_ptr.vmem [resolvable:$true] %s43_s12  ;;  %s66_s15 = int_to_ptr.hbm [resolvable:$true] %s65_s15 }
   0xd   :  { %46 = dma.hbm_to_vmem [thread:$0]  %s42_s3, 128, %s44_s12, [#allocation6]  }
   0xe   :  { %s740_s0 = smov [#allocation10]  }
   0xf   :  { %s67_s16 = sshll.u32 %s740_s0, 4  ;;  %s68_s16 = int_to_ptr.vmem [resolvable:$true] %s67_s16 }
  0x10   :  { %70 = dma.hbm_to_vmem [thread:$0]  %s66_s15, 128, %s68_s16, [#allocation9]  }
  0x11   :  { %726 = dma.done.wait [#allocation3], 128  }
  0x12   :  { %727 = vsyncadd [#allocation3], 4294967168 }
  0x13   :  { %728 = dma.done.wait [#allocation6], 256  }
  0x14   :  { %729 = vsyncadd [#allocation6], 4294967040 }
  0x15   :  { %730 = dma.done.wait [#allocation9], 4352  }
  0x16   :  { %731 = vsyncadd [#allocation9], 4294962944  ;;  %vm103_vm0 = vcmask 1042432   ;;  %v96_v0 = vld [vmem:[#allocation8 + $0x10] sm:$0x7]  ;;  %v95_v1 = vld [vmem:[#allocation8 + $0x8] sm:$0xff] }
  0x17   :  { %527 = vmatpush.msk.msra.mxu0 %vm103_vm0, %v96_v0  ;;  %v155_v2 = vld [vmem:[#allocation8 + $0x50] sm:$0xff]  ;;  %v154_v3 = vld [vmem:[#allocation8 + $0x48] sm:$0xff]  ;;  %v94_v4 = vld [vmem:[#allocation8] sm:$0xff]  ;;  %vm99_vm1 = vcmask 154624   ;;  %vm158_vm2 = vcmask 261120   ;;  %s741_s2 = smov 64  }
  0x18   :  { %v795_v5 = vld [vmem:[#allocation2] sm:$0x3f]  ;;  %198 = vmatpush.msra.mxu2 %v155_v2  ;;  %v153_v6 = vld [vmem:[#allocation8 + $0x40] sm:$0xff]  ;;  %v152_v7 = vld [vmem:[#allocation8 + $0x38] sm:$0xff]  ;;  %s742_s4 = smov 84   ;;  %s743_s17 = smov 96  }
  0x19   :  { %121 = vmatpush.msra.mxu0 %v95_v1  ;;  %v150_v8 = vld [vmem:[#allocation8 + $0x30] sm:$0xff]  ;;  %v93_v9 = vld [vmem:[#allocation7] sm:$0x3f]  ;;  %v149_v10 = vld [vmem:[#allocation8 + $0x28] sm:$0xff]  ;;  %s744_s18 = smov 32   ;;  %vm286_vm7 = vcmask 1045504  }
  0x1a   :  { %199 = vmatpush.msra.mxu2 %v154_v3  ;;  %174 = vmatpush.msra.mxu1 %v150_v8  ;;  %v148_v11 = vld [vmem:[#allocation8 + $0x20] sm:$0xff]  ;;  %v147_v12 = vld [vmem:[#allocation8 + $0x18] sm:$0xff]  ;;  %v558_v13 = vld [vmem:[#allocation10] ss:$0 sm:$0xff]  ;;  %vm282_vm8 = vcmask 48128   ;;  %s745_s19 = smov 5  }
  0x1b   :  { %122 = vmatpush.msra.mxu0 %v94_v4  ;;  %v559_v17 = vld [vmem:[#allocation10 + $0x2] ss:$0 sm:$0xff]  ;;  %v560_v20 = vld [vmem:[#allocation10 + $0x1] ss:$0 sm:$0xff]  ;;  %v251_v42 = vld [vmem:[#allocation8 + $0x70] sm:$0xff]  ;;  %s746_s20 = smov 12  }
  0x1c   :  { %528 = vmatmul.msk.f32.vlgmr.msra.gmra.mxu0 %vm99_vm1, %v795_v5  ;;  %200 = vmatpush.msra.mxu2 %v153_v6  ;;  %v250_v43 = vld [vmem:[#allocation8 + $0x68] sm:$0xff]  ;;  %v249_v44 = vld [vmem:[#allocation8 + $0x60] sm:$0xff]  ;;  %v248_v45 = vld [vmem:[#allocation8 + $0x58] sm:$0xff]  ;;  %vm340_vm9 = vcmask 1046528   ;;  %s747_s21 = smov 112   ;;  %vm326_vm14 = vcmask 130048  }
  0x1d   :  { %175 = vmatpush.msra.mxu1 %v149_v10  ;;  %271 = vmatpush.msra.mxu3 %v251_v42  ;;  %v373_v52 = vld [vmem:[#allocation8 + $0xd0] sm:$0xff]  ;;  %v372_v53 = vld [vmem:[#allocation8 + $0xc8] sm:$0xff]  ;;  %v371_v54 = vld [vmem:[#allocation8 + $0xc0] sm:$0xff]  ;;  %vm328_vm15 = vcmask 228352   ;;  %vm336_vm0 = vcmask 252928   ;;  %s748_s22 = smov 101  }
  0x1e   :  { %201 = vmatpush.msra.mxu2 %v152_v7  ;;  %v370_v55 = vld [vmem:[#allocation8 + $0xb8] sm:$0xff]  ;;  %v92_v57 = vld [vmem:[#allocation5] sm:$0x3f]  ;;  %v561_v58 = vld [vmem:[#allocation10 + $0x3] ss:$0 sm:$0xff]  ;;  %s749_s23 = smov [#allocation11]  }
  0x1f   :  { %531 = vmatmul.msk.f32.vlgmr.msra.gmra.mxu2 %vm158_vm2, %v93_v9  ;;  %176 = vmatpush.msra.mxu1 %v148_v11  ;;  %v279_v60 = vld [vmem:[#allocation8 + $0xf8] sm:$0x3f]  ;;  %v280_v63 = vld [vmem:[#allocation8 + $0x100] sm:$0x3f]  ;;  %v562_v0 = vld [vmem:[#allocation10 + $0x6] ss:$0 sm:$0xff] }
  0x20   :  { %272 = vmatpush.msra.mxu3 %v250_v43  ;;  %v333_v8 = vld [vmem:[#allocation8 + $0x90] sm:$0x7f]  ;;  %v331_v10 = vld [vmem:[#allocation8 + $0x80] sm:$0xff]  ;;  %s513_s24 = sshll.u32 %s749_s23, 4  ;;  %s515_s27 = sshll.u32 %s833_s5, 4  ;;  %s514_s24 = int_to_ptr.vmem [resolvable:$true] %s513_s24  ;;  %s516_s27 = int_to_ptr.hbm [resolvable:$true] %s515_s27 }
  0x21   :  { %177 = vmatpush.msra.mxu1 %v147_v12 }
  0x22   :  { %273 = vmatpush.msra.mxu3 %v249_v44 }
  0x23   :  { %536 = vmatpush.msk.msrb.mxu1 %vm340_vm9, %v333_v8 }
  0x24   :  { %274 = vmatpush.msra.mxu3 %v248_v45 }
  0x26   :  { %415 = vmatpush.msrb.mxu3 %v373_v52 }
  0x28   :  { %416 = vmatpush.msrb.mxu3 %v372_v53 }
  0x2a   :  { %417 = vmatpush.msrb.mxu3 %v371_v54 }
  0x2c   :  { %418 = vmatpush.msrb.mxu3 %v370_v55 }
  0x99   :  { %v124_v14 = vpop.f32.mrf.mxu0 }
  0x9a   :  { %v799_v15 = vadd.f32 %v558_v13, %v124_v14 }
  0x9c   :  { %v127_v16 = vmax.f32 %v799_v15, 0.0  ;;  %v529_v4 = vmul.f32 -1.442695, %v799_v15 }
  0x9e   :  { %530 = vmatmul.msk.f32.vlgmr.msra.gmra.mxu1 %vm158_vm2, %v127_v16 }
  0xa2   :  { %v203_v18 = vpop.f32.mrf.mxu2 }
  0xa3   :  { %v204_v19 = vadd.f32 %v559_v17, %v203_v18 }
  0xa5   :  { %227 = vrot.lane.b32.xlu0 %v204_v19, %s741_s2 }
 0x117   :  { %v228_v34 = vpop.permute.xlu0 %227 }
 0x11b   :  { %v179_v21 = vpop.f32.mrf.mxu1 }
 0x11c   :  { %v180_v22 = vadd.f32 %v560_v20, %v179_v21 }
 0x11e   :  { %v206_v23 = vadd.f32 %v204_v19, %v180_v22 }
 0x120   :  { %v532_v24 = vmul.f32 -1.442695, %v206_v23  ;;  %v368_v23 = vld [vmem:[#allocation8 + $0xb0] sm:$0xff] }
 0x121   :  { %391 = vmatpush.msrb.mxu2 %v368_v23 }
 0x122   :  { %566 = vpow2.f32 %v532_v24 }
 0x128   :  { %v567_v25 = vpop.eup %566 }
 0x129   :  { %v210_v26 = vadd.f32 1.0, %v567_v25 }
 0x12b   :  { %568 = vrcp.f32 %v210_v26  ;;  %v222_v30 = vand.u32 2147483648, %v210_v26  ;;  %v220_v32 = vand.u32 2147483647, %v210_v26  ;;  %vm216_vm4 = vweird.f32 %v210_v26 }
 0x12d   :  { %v223_v35 = vor.u32 1.1754944e-38, %v222_v30  ;;  %vm221_vm6 = vcmp.eq.f32.partialorder %v220_v32, 8.507059e+37  ;;  %v366_v30 = vld [vmem:[#allocation8 + $0xa0] sm:$0xff]  ;;  %v563_v32 = vld [vmem:[#allocation10 + $0x4] ss:$0 sm:$0xff] }
 0x131   :  { %v569_v27 = vpop.eup %568 }
 0x132   :  { %v212_v28 = vmul.f32 %v569_v27, %v210_v26  ;;  %vm217_vm3 = vweird.f32 %v569_v27 }
 0x133   :  { %vm218_vm5 = vmor %vm216_vm4, %vm217_vm3 }
 0x134   :  { %v213_v29 = vsub.f32 1.0, %v212_v28 }
 0x136   :  { %v214_v31 = vmul.f32 %v569_v27, %v213_v29  ;;  %v367_v29 = vld [vmem:[#allocation8 + $0xa8] sm:$0xff] }
 0x137   :  { %392 = vmatpush.msrb.mxu2 %v367_v29 }
 0x138   :  { %v215_v33 = vadd.f32 %v569_v27, %v214_v31  ;;  %v365_v31 = vld [vmem:[#allocation8 + $0x98] sm:$0xff] }
 0x139   :  { %393 = vmatpush.msrb.mxu2 %v366_v30 }
 0x13a   :  { %v219_v36 = vsel %vm218_vm5, %v569_v27, %v215_v33 }
 0x13b   :  { %v224_v37 = vsel %vm221_vm6, %v223_v35, %v219_v36  ;;  %394 = vmatpush.msrb.mxu2 %v365_v31  ;;  %v564_v36 = vld [vmem:[#allocation10 + $0x5] ss:$0 sm:$0xff]  ;;  %vm502_vm6 = vcmask 39936  }
 0x13c   :  { %v230_v38 = vmul.f32 %v228_v34, %v224_v37  ;;  %v237_v47 = vsub.f32 1.0, %v224_v37 }
 0x13e   :  { %232 = vrot.lane.b32.xlu0 %v230_v38, %s741_s2 }
 0x146   :  { %316 = vrot.lane.b32.xlu0 %v799_v15, %s742_s4 }
 0x1b0   :  { %v233_v39 = vpop.permute.xlu0 %232 }
 0x1b1   :  { %v235_v40 = vadd.f32 %v233_v39, %v180_v22  ;;  %v330_v22 = vld [vmem:[#allocation8 + $0x78] sm:$0xff] }
 0x1b3   :  { %570 = vtanh.f32 %v235_v40 }
 0x1b4   :  { %572 = vpow2.f32 %v529_v4 }
 0x1b8   :  { %v317_v25 = vpop.permute.xlu0 %316 }
 0x1b9   :  { %v571_v41 = vpop.eup %570 }
 0x1ba   :  { %239 = vrot.lane.b32.xlu1 %v571_v41, %s743_s17  ;;  %v573_v6 = vpop.eup %572 }
 0x1bb   :  { %v131_v7 = vadd.f32 1.0, %v573_v6  ;;  %v565_v6 = vld [vmem:[#allocation10 + $0x7] ss:$0 sm:$0xff] }
 0x1bd   :  { %574 = vrcp.f32 %v131_v7  ;;  %vm137_vm11 = vweird.f32 %v131_v7  ;;  %v141_v15 = vand.u32 2147483647, %v131_v7 }
 0x1bf   :  { %vm142_vm13 = vcmp.eq.f32.partialorder %v141_v15, 8.507059e+37 }
 0x1c2   :  { %243 = vrot.lane.b32.xlu1 %v93_v9, %s744_s18  ;;  %v332_v9 = vld [vmem:[#allocation8 + $0x88] sm:$0xff] }
 0x1c3   :  { %357 = vmatpush.msrb.mxu1 %v332_v9  ;;  %v575_v11 = vpop.eup %574 }
 0x1c4   :  { %v133_v12 = vmul.f32 %v575_v11, %v131_v7  ;;  %vm138_vm10 = vweird.f32 %v575_v11 }
 0x1c5   :  { %358 = vmatpush.msrb.mxu1 %v331_v10  ;;  %vm139_vm12 = vmor %vm137_vm11, %vm138_vm10 }
 0x1c6   :  { %v134_v13 = vsub.f32 1.0, %v133_v12 }
 0x1c7   :  { %359 = vmatpush.msrb.mxu1 %v330_v22 }
 0x1c8   :  { %v135_v14 = vmul.f32 %v575_v11, %v134_v13 }
 0x1ca   :  { %v136_v16 = vadd.f32 %v575_v11, %v135_v14 }
 0x1cc   :  { %v140_v17 = vsel %vm139_vm12, %v575_v11, %v136_v16 }
 0x22c   :  { %v240_v46 = vpop.permute.xlu1 %239 }
 0x22d   :  { %v242_v49 = vmul.f32 %v240_v46, %v237_v47 }
 0x234   :  { %v244_v48 = vpop.permute.xlu1 %243 }
 0x235   :  { %v246_v50 = vmul.f32 %v244_v48, %v224_v37 }
 0x237   :  { %v247_v51 = vadd.f32 %v246_v50, %v242_v49 }
 0x239   :  { %255 = vrot.lane.b32.xlu2 %v247_v51, %s743_s17 }
 0x293   :  { %v256_v56 = vpop.permute.xlu2 %255 }
 0x294   :  { %533 = vmatmul.msk.f32.vlgmr.msra.gmra.mxu3 %vm158_vm2, %v256_v56 }
 0x29c   :  { %539 = vmatmul.msk.f32.vlgmr.msrb.gmra.mxu3 %vm158_vm2, %v92_v57 }
 0x317   :  { %v276_v59 = vpop.f32.mrf.mxu3 }
 0x318   :  { %v277_v61 = vadd.f32 %v561_v58, %v276_v59 }
 0x31a   :  { %v281_v62 = vmul.f32 %v279_v60, %v277_v61 }
 0x31c   :  { %534 = vmatpush.msk.msrb.mxu0 %vm286_vm7, %v281_v62  ;;  %vm504_vm7 = vcmask 302080  }
 0x31d   :  { %535 = vmatmul.msk.f32.vlgmr.msrb.gmra.mxu0 %vm282_vm8, %v280_v63  ;;  %vm506_vm8 = vcmask 562176  }
 0x31f   :  { %v420_v1 = vpop.f32.mrf.mxu3 }
 0x320   :  { %v811_v2 = vadd.f32 %v562_v0, %v420_v1  ;;  %v468_v0 = vld [vmem:[#allocation8 + $0xf0] sm:$0xff]  ;;  %v467_v1 = vld [vmem:[#allocation8 + $0xe8] sm:$0xff] }
 0x321   :  { %488 = vmatpush.msra.mxu0 %v468_v0 }
 0x322   :  { %444 = vrot.lane.b32.xlu0 %v811_v2, %s741_s2 }
 0x323   :  { %489 = vmatpush.msra.mxu0 %v467_v1 }
 0x32a   :  { %460 = vrot.lane.b32.xlu0 %v92_v57, %s744_s18 }
 0x332   :  { %499 = vrot.lane.b32.xlu0 %v247_v51, %s745_s19 }
 0x394   :  { %v445_v52 = vpop.permute.xlu0 %444 }
 0x39a   :  { %v307_v3 = vpop.f32.mrf.mxu0 }
 0x39b   :  { %311 = vrot.lane.b32.xlu2 %v307_v3, %s744_s18  ;;  %v465_v3 = vld [vmem:[#allocation8 + $0xd8] sm:$0xff] }
 0x39c   :  { %v461_v59 = vpop.permute.xlu0 %460 }
 0x3a3   :  { %323 = vrot.lane.b32.xlu2 %v795_v5, %s746_s20  ;;  %v143_v5 = vand.u32 2147483648, %v131_v7 }
 0x3a4   :  { %v500_v10 = vpop.permute.xlu0 %499 }
 0x3a5   :  { %v144_v18 = vor.u32 1.1754944e-38, %v143_v5 }
 0x3a7   :  { %v145_v19 = vsel %vm142_vm13, %v144_v18, %v140_v17 }
 0x3f5   :  { %v312_v20 = vpop.permute.xlu2 %311 }
 0x3f6   :  { %v314_v21 = vmul.f32 %v312_v20, %v145_v19 }
 0x3f8   :  { %320 = vrot.lane.b32.xlu1 %v314_v21, %s747_s21 }
 0x3fd   :  { %v324_v24 = vpop.permute.xlu2 %323 }
 0x46a   :  { %v321_v26 = vpop.permute.xlu1 %320 }
 0x46b   :  { %v327_v27 = vsel %vm326_vm14, %v317_v25, %v321_v26 }
 0x46c   :  { %v329_v28 = vsel %vm328_vm15, %v327_v27, %v324_v24 }
 0x46d   :  { %537 = vmatmul.msk.f32.vlgmr.msrb.gmra.mxu1 %vm336_vm0, %v329_v28 }
 0x4ea   :  { %v361_v33 = vpop.f32.mrf.mxu1 }
 0x4eb   :  { %v362_v34 = vadd.f32 %v563_v32, %v361_v33 }
 0x4ed   :  { %v364_v35 = vmax.f32 %v362_v34, 0.0 }
 0x4ef   :  { %538 = vmatmul.msk.f32.vlgmr.msrb.gmra.mxu2 %vm158_vm2, %v364_v35 }
 0x572   :  { %v396_v37 = vpop.f32.mrf.mxu2 }
 0x573   :  { %v397_v38 = vadd.f32 %v564_v36, %v396_v37 }
 0x575   :  { %v423_v39 = vadd.f32 %v811_v2, %v397_v38  ;;  %v466_v2 = vld [vmem:[#allocation8 + $0xe0] sm:$0xff] }
 0x576   :  { %490 = vmatpush.msra.mxu0 %v466_v2 }
 0x577   :  { %v540_v40 = vmul.f32 -1.442695, %v423_v39 }
 0x578   :  { %491 = vmatpush.msra.mxu0 %v465_v3 }
 0x579   :  { %576 = vpow2.f32 %v540_v40 }
 0x57f   :  { %v577_v41 = vpop.eup %576 }
 0x580   :  { %v427_v42 = vadd.f32 1.0, %v577_v41 }
 0x582   :  { %578 = vrcp.f32 %v427_v42  ;;  %v439_v46 = vand.u32 2147483648, %v427_v42  ;;  %v437_v48 = vand.u32 2147483647, %v427_v42  ;;  %vm433_vm3 = vweird.f32 %v427_v42 }
 0x584   :  { %v440_v50 = vor.u32 1.1754944e-38, %v439_v46  ;;  %vm438_vm5 = vcmp.eq.f32.partialorder %v437_v48, 8.507059e+37 }
 0x588   :  { %v579_v43 = vpop.eup %578 }
 0x589   :  { %v429_v44 = vmul.f32 %v579_v43, %v427_v42  ;;  %vm434_vm1 = vweird.f32 %v579_v43 }
 0x58a   :  { %vm435_vm4 = vmor %vm433_vm3, %vm434_vm1 }
 0x58b   :  { %v430_v45 = vsub.f32 1.0, %v429_v44 }
 0x58d   :  { %v431_v47 = vmul.f32 %v579_v43, %v430_v45 }
 0x58f   :  { %v432_v49 = vadd.f32 %v579_v43, %v431_v47 }
 0x591   :  { %v436_v51 = vsel %vm435_vm4, %v579_v43, %v432_v49 }
 0x592   :  { %v441_v53 = vsel %vm438_vm5, %v440_v50, %v436_v51 }
 0x593   :  { %v447_v54 = vmul.f32 %v445_v52, %v441_v53  ;;  %v454_v58 = vsub.f32 1.0, %v441_v53  ;;  %v463_v62 = vmul.f32 %v461_v59, %v441_v53 }
 0x595   :  { %449 = vrot.lane.b32.xlu1 %v447_v54, %s741_s2 }
 0x607   :  { %v450_v55 = vpop.permute.xlu1 %449 }
 0x608   :  { %v452_v56 = vadd.f32 %v450_v55, %v397_v38 }
 0x60a   :  { %580 = vtanh.f32 %v452_v56 }
 0x610   :  { %v581_v57 = vpop.eup %580 }
 0x611   :  { %456 = vrot.lane.b32.xlu2 %v581_v57, %s743_s17 }
 0x66b   :  { %v457_v60 = vpop.permute.xlu2 %456 }
 0x66c   :  { %v459_v61 = vmul.f32 %v457_v60, %v454_v58 }
 0x66e   :  { %v464_v63 = vadd.f32 %v463_v62, %v459_v61 }
 0x670   :  { %496 = vrot.lane.b32.xlu2 %v464_v63, %s748_s22  ;;  %472 = vrot.lane.b32.xlu1 %v464_v63, %s743_s17 }
 0x6ca   :  { %v497_v9 = vpop.permute.xlu2 %496 }
 0x6e2   :  { %v473_v4 = vpop.permute.xlu1 %472 }
 0x6e3   :  { %541 = vmatmul.msk.f32.vlgmr.msra.gmra.mxu0 %vm158_vm2, %v473_v4 }
 0x760   :  { %v493_v7 = vpop.f32.mrf.mxu0 }
 0x761   :  { %v494_v8 = vadd.f32 %v565_v6, %v493_v7 }
 0x763   :  { %v503_v11 = vsel %vm502_vm6, %v494_v8, %v497_v9 }
 0x764   :  { %v505_v12 = vsel %vm504_vm7, %v503_v11, %v500_v10 }
 0x765   :  { %507 = vst.msk [vmem:[#allocation11] sm:$0x3f] %vm506_vm8, %v505_v12 }
 0x766   :  { %518 = dma.vmem_to_hbm [thread:$0]  %s514_s24, 128, %s516_s27, [#allocation4]  }
 0x767   :  { %732 = dma.done.wait [#allocation4], 128  }
 0x768   :  { %733 = vsyncadd [#allocation4], 4294967168 }
 0x769   :  { %523 = vsyncpa [#allocation3], 1 }
 0x76a   :  { %524 = vsyncpa [#allocation6], 1 }
 0x76b   :  { %525 = vsyncpa [#allocation9], 1 }
 0x76c   :  { %526 = vsyncpa [#allocation4], 1 }

</bundles_post_ra>
